<compile_context>
chip_gen: v7x
topology: tpu7x:2x2x1
jax: 0.10.0
libtpu: 0.0.40
codegen_flags: <defaults>
</compile_context>

<pallas_src>
import functools
import math

import jax
import jax.numpy as jnp
from jax.experimental import pallas as pl
from jax.experimental.pallas import tpu as pltpu


# --------------------------- pe construction ---------------------------------


@functools.lru_cache(maxsize=None)
def _build_pe(d_model: int, max_len: int = 500) -> jnp.ndarray:
    """Positional-encoding buffer, identical to the PyTorch __init__ (f32;
    cast to the activation dtype at call time). Cached across calls."""
    position = jnp.arange(0, max_len, dtype=jnp.float32)[:, None]            # (L, 1)
    div_term = jnp.exp(
        jnp.arange(0, d_model, 2, dtype=jnp.float32) * (-math.log(10000.0) / d_model)
    )
    pe = jnp.zeros((max_len, d_model), dtype=jnp.float32)
    pe = pe.at[:, 0::2].set(jnp.sin(position * div_term))
    pe = pe.at[:, 1::2].set(jnp.cos(position * div_term)[:, : d_model // 2])
    return pe


# ---------------------------- device tuning -----------------------------------


def _tpu_generation() -> str:
    try:
        kind = jax.devices()[0].device_kind.lower()
    except Exception:
        return ""
    if "v5 lite" in kind or "v5e" in kind or "v5litepod" in kind:
        return "v5e"
    if "v6" in kind:
        return "v6e"
    if "v7" in kind or "7x" in kind:
        return "v7x"
    return ""


def _default_tuning() -> dict:
    gen = _tpu_generation()
    if gen == "v7x":
        # 3.2 TB/s HBM: bigger blocks to amortize ~0.35us/step; 2 TCs -> force split.
        return dict(max_block_bytes=6 << 20, tiny_bytes=1 << 20, force_multi_tile=True)
    if gen == "v5e":
        # 16 MiB scoped-VMEM default: keep 2x(in)+2x(out) ~= 12 MiB.
        return dict(max_block_bytes=3 << 20, tiny_bytes=256 << 10, force_multi_tile=False)
    # v6e / unknown.
    return dict(max_block_bytes=4 << 20, tiny_bytes=256 << 10, force_multi_tile=False)


# ------------------------------- kernel ---------------------------------------


def _add_pe_kernel(x_ref, pe_ref, o_ref, *, rep: int):
    # Elementwise VPU add on lane-dense blocks.
    #   seq-major   : pe block is (row_tile, pe_width); lane repeat done here.
    #   batch-major : pe block is (1, lane_tile); broadcasts over sublanes.
    pe = pe_ref[...]
    if rep > 1:
        pe = jnp.tile(pe, (1, rep))   # lane-axis repeat: free filler in an HBM-bound add
    o_ref[...] = x_ref[...] + pe


# --------------------------- tiling helpers ------------------------------------


def _pick_row_tile(rows: int, row_bytes: int, max_block_bytes: int, sublane_mult: int) -> int:
    """Rows per block: the whole axis if it fits the byte budget, otherwise the
    largest multiple of the (dtype-aware) sublane count that does."""
    cap = max(1, max_block_bytes // max(row_bytes, 1))
    if cap >= rows or rows <= sublane_mult:
        return rows
    # May overshoot the byte budget by < sublane_mult rows when cap < sublane_mult;
    # harmless at multi-MiB defaults.
    return max(sublane_mult, (cap // sublane_mult) * sublane_mult)


def _pick_lane_tile(total_lanes: int, target_lanes: int = 2048) -> int:
    """Lane-block width: a multiple of 128 (unmasked full-vreg stores), or the
    full width if the array is narrow."""
    if total_lanes <= max(target_lanes, 128):
        return total_lanes
    return (target_lanes // 128) * 128


def _maybe_force_split(row_tile: int, rows: int, other_axis_tiles: int,
                       sublane_mult: int, enable: bool) -> int:
    """On multi-TensorCore chips, avoid a (1,1) grid: split the row axis so both
    cores get a tile. Neutral on single-TC chips (not enabled there)."""
    if (not enable) or other_axis_tiles > 1 or row_tile < rows or rows < 2 * sublane_mult:
        return row_tile
    half = -(-rows // 2)
    new_tile = -(-half // sublane_mult) * sublane_mult
    if new_tile >= rows:
        return row_tile
    return new_tile


# ------------------------------- wrapper ---------------------------------------


def positional_encoding(
    x: jnp.ndarray,
    pe: jnp.ndarray,
    batch_first: bool = False,
    *,
    max_block_bytes: int | None = None,
    force_pallas: bool = False,
    force_multi_tile: bool | None = None,
) -> jnp.ndarray:
    """Forward pass of PositionalEncoding.

    batch_first=False: x (S, B, D) -> x + pe[:S][:, None, :]
    batch_first=True : x (B, S, D) -> x + pe[:S][None, :, :]
    """
    if x.ndim != 3:
        raise ValueError(f"expected a rank-3 input, got shape {x.shape}")
    if batch_first:
        B, S, D = x.shape
    else:
        S, B, D = x.shape
    if S > pe.shape[0]:
        raise ValueError(f"sequence length {S} exceeds max_len {pe.shape[0]}")
    if D != pe.shape[1]:
        raise ValueError(f"d_model mismatch: x has {D}, pe has {pe.shape[1]}")

    tuning = _default_tuning()
    if max_block_bytes is None:
        max_block_bytes = tuning["max_block_bytes"]
    if force_multi_tile is None:
        force_multi_tile = tuning["force_multi_tile"]

    itemsize = jnp.dtype(x.dtype).itemsize
    sublane_mult = max(8, 32 // itemsize)          # 8 f32, 16 bf16, 32 int8/fp8
    # NOTE: pe is cast to x.dtype before the add (see correctness notes above).
    pe_slice = pe[:S].astype(x.dtype)

    # Tiny inputs: custom-call + DMA-setup overhead dwarfs data movement; a
    # fused XLA add is strictly faster (threshold is device-aware).
    if not force_pallas and x.size * itemsize < tuning["tiny_bytes"]:
        if batch_first:
            return x + pe_slice[None, :, :]
        return x + pe_slice[:, None, :]

    parallel2 = pltpu.CompilerParams(dimension_semantics=("parallel", "parallel"))

    if batch_first:
        # x: (B, S, D); pe spans a full (S, D) row and is constant over batch.
        # Lane-dense 2-D view: rows = B, lanes = S*D.
        sd = S * D
        x2 = x.reshape(B, sd)                      # free metadata reshape
        pe2 = pe_slice.reshape(1, sd)
        lane_tile = _pick_lane_tile(sd)
        row_tile = _pick_row_tile(B, lane_tile * itemsize, max_block_bytes, sublane_mult)
        num_lane_tiles = pl.cdiv(sd, lane_tile)
        row_tile = _maybe_force_split(row_tile, B, num_lane_tiles, sublane_mult, force_multi_tile)
        # Lane axis OUTER, row axis inner: pe's block index depends only on the
        # lane axis, so the same pe tile stays resident across row steps.
        grid = (num_lane_tiles, pl.cdiv(B, row_tile))
        out2 = pl.pallas_call(
            functools.partial(_add_pe_kernel, rep=1),
            out_shape=jax.ShapeDtypeStruct((B, sd), x.dtype),
            grid=grid,
            in_specs=[
                pl.BlockSpec((row_tile, lane_tile), lambda j, i: (i, j)),
                pl.BlockSpec((1, lane_tile), lambda j, i: (0, j)),
            ],
            out_specs=pl.BlockSpec((row_tile, lane_tile), lambda j, i: (i, j)),
            compiler_params=parallel2,
        )(x2, pe2)
        return out2.reshape(B, S, D)

    # batch_first == False: x (S, B, D); pe varies along rows (S) and repeats
    # every D lanes of the 2-D view (lanes = B*D).
    bd = B * D
    x2 = x.reshape(S, bd)                          # free metadata reshape
    tb0 = 128 // math.gcd(D, 128)                  # min batch copies for a 128-aligned pe width
    if tb0 >= B:
        # Whole batch fits below one 128-aligned pe width; replicate fully
        # (tiny) and keep a single lane block.
        batch_tile = B
        wrap_rep = B
        kernel_rep = 1
    else:
        batch_tile = tb0
        while batch_tile * 2 <= B and batch_tile * D < 2048:
            batch_tile *= 2
        wrap_rep = tb0                             # wrapper-side replication capped at 128-aligned width
        kernel_rep = batch_tile // tb0             # remaining repeat done in-kernel
    lane_tile = batch_tile * D                     # multiple of 128, or full B*D
    pe_width = wrap_rep * D
    pe_tiled = jnp.tile(pe_slice, (1, wrap_rep)) if wrap_rep > 1 else pe_slice
    row_tile = _pick_row_tile(S, lane_tile * itemsize, max_block_bytes, sublane_mult)
    num_lane_tiles = pl.cdiv(bd, lane_tile)
    row_tile = _maybe_force_split(row_tile, S, num_lane_tiles, sublane_mult, force_multi_tile)
    # Row axis OUTER, lane axis inner: pe's block index depends only on the row
    # axis, so the (narrow) pe tile stays resident across lane steps.
    grid = (pl.cdiv(S, row_tile), num_lane_tiles)
    out2 = pl.pallas_call(
        functools.partial(_add_pe_kernel, rep=kernel_rep),
        out_shape=jax.ShapeDtypeStruct((S, bd), x.dtype),
        grid=grid,
        in_specs=[
            pl.BlockSpec((row_tile, lane_tile), lambda i, j: (i, j)),
            pl.BlockSpec((row_tile, pe_width), lambda i, j: (i, 0)),
        ],
        out_specs=pl.BlockSpec((row_tile, lane_tile), lambda i, j: (i, j)),
        compiler_params=parallel2,
    )(x2, pe_tiled)
    return out2.reshape(S, B, D)


# -------------------------------- demo -----------------------------------------

if __name__ == "__main__":
    d_model = 32
    max_len = 500
    pe = _build_pe(d_model, max_len)

    key = jax.random.PRNGKey(0)
    k1, k2, k3, k4, k5 = jax.random.split(key, 5)

    # 1) Module-consistent small shape, seq-first (default): seq=8, batch=2.
    x_sf = jax.random.normal(k1, (8, 2, d_model), dtype=jnp.float32)
    out_sf = jax.block_until_ready(
        positional_encoding(x_sf, pe, batch_first=False, force_pallas=True)
    )
    ref_sf = x_sf + pe[:8][:, None, :]
    assert out_sf.shape == x_sf.shape
    assert jnp.allclose(out_sf, ref_sf, atol=1e-6, rtol=1e-6), "seq-first mismatch"

    # Auto-dispatch (tiny input -> fused XLA add) must agree too.
    out_auto = jax.block_until_ready(positional_encoding(x_sf, pe, batch_first=False))
    assert jnp.allclose(out_auto, ref_sf, atol=1e-6, rtol=1e-6), "auto path mismatch"

    # 2) batch_first=True path (no transpose round-trip): batch=2, seq=8.
    x_bf = jax.random.normal(k2, (2, 8, d_model), dtype=jnp.float32)
    out_bf = jax.block_until_ready(
        positional_encoding(x_bf, pe, batch_first=True, force_pallas=True)
    )
    ref_bf = x_bf + pe[:8][None, :, :]
    assert jnp.allclose(out_bf, ref_bf, atol=1e-6, rtol=1e-6), "batch-first mismatch"

    # 3) Seq-first multi-tile case: exercises the narrow pe BlockSpec + in-kernel
    #    lane repeat (kernel_rep=4) and a partial final row block (100x16x32 f32).
    x_mt = jax.random.normal(k3, (100, 16, d_model), dtype=jnp.float32)
    out_mt = jax.block_until_ready(
        positional_encoding(
            x_mt, pe, batch_first=False, force_pallas=True, max_block_bytes=16 * 1024
        )
    )
    ref_mt = x_mt + pe[:100][:, None, :]
    assert jnp.allclose(out_mt, ref_mt, atol=1e-6, rtol=1e-6), "multi-tile mismatch"

    # 4) batch-first multi-tile case (lane-outer grid, resident pe tile,
    #    partial lane block).
    x_bmt = jax.random.normal(k4, (16, 100, d_model), dtype=jnp.float32)
    out_bmt = jax.block_until_ready(
        positional_encoding(
            x_bmt, pe, batch_first=True, force_pallas=True, max_block_bytes=32 * 1024
        )
    )
    ref_bmt = x_bmt + pe[:100][None, :, :]
    assert jnp.allclose(out_bmt, ref_bmt, atol=1e-6, rtol=1e-6), "bf multi-tile mismatch"

    # 5) bf16 seq-first: exercises dtype-aware sublane rounding (row tile = 16)
    #    plus the in-kernel pe repeat.
    x_b16 = jax.random.normal(k5, (64, 16, d_model), dtype=jnp.float32).astype(jnp.bfloat16)
    out_b16 = jax.block_until_ready(
        positional_encoding(
            x_b16, pe, batch_first=False, force_pallas=True, max_block_bytes=8 * 1024
        )
    )
    ref_b16 = x_b16 + pe[:64].astype(jnp.bfloat16)[:, None, :]
    assert jnp.allclose(
        out_b16.astype(jnp.float32), ref_b16.astype(jnp.float32), atol=1e-2, rtol=1e-2
    ), "bf16 mismatch"

    print("KERNEL_OK")
</pallas_src>

<mosaic_0001>
module attributes {stable_mosaic.version = 11 : i64} {
  func.func @_add_pe_kernel(%arg0: i32, %arg1: i32, %arg2: memref<8x64xf32, #tpu.memory_space<vmem>>, %arg3: memref<8x64xf32, #tpu.memory_space<vmem>>, %arg4: memref<8x64xf32, #tpu.memory_space<vmem>>) attributes {dimension_semantics = [#tpu.dimension_semantics<parallel>, #tpu.dimension_semantics<parallel>], iteration_bounds = array<i64: 1, 1>, scalar_prefetch = 0 : i64, scratch_operands = 0 : i64, tpu.core_type = #tpu.core_type<tc>, window_params = [{transform_indices = @transform_0, window_bounds = array<i64: 8, 64>}, {transform_indices = @transform_1, window_bounds = array<i64: 8, 64>}, {transform_indices = @transform_2, window_bounds = array<i64: 8, 64>}]} {
    %c0 = arith.constant 0 : index
    %c0_0 = arith.constant 0 : index
    %0 = vector.load %arg3[%c0, %c0_0] : memref<8x64xf32, #tpu.memory_space<vmem>>, vector<8x64xf32>
    %c0_1 = arith.constant 0 : index
    %c0_2 = arith.constant 0 : index
    %1 = vector.load %arg2[%c0_1, %c0_2] : memref<8x64xf32, #tpu.memory_space<vmem>>, vector<8x64xf32>
    %2 = arith.addf %1, %0 : vector<8x64xf32>
    %c0_3 = arith.constant 0 : index
    %c0_4 = arith.constant 0 : index
    %3 = vector.load %arg4[%c0_3, %c0_4] : memref<8x64xf32, #tpu.memory_space<vmem>>, vector<8x64xf32>
    tpu.vector_store %arg4[%c0_3, %c0_4], %2 {strides = array<i32>} : memref<8x64xf32, #tpu.memory_space<vmem>>, vector<8x64xf32>,
    return
  }
  func.func @transform_0(%arg0: i32, %arg1: i32) -> (i32, i32) {
    %c0_i32 = arith.constant 0 : i32
    return %arg0, %arg1 : i32, i32
  }
  func.func @transform_1(%arg0: i32, %arg1: i32) -> (i32, i32) {
    %c0_i32 = arith.constant 0 : i32
    %c0_i32_0 = arith.constant 0 : i32
    return %arg0, %c0_i32 : i32, i32
  }
  func.func @transform_2(%arg0: i32, %arg1: i32) -> (i32, i32) {
    %c0_i32 = arith.constant 0 : i32
    return %arg0, %arg1 : i32, i32
  }
}

</mosaic_0001>

<bundles_post_ra>
// kernel: tpu_custom_call.1
= control target key start
LH: loop header
LB: loop body
LE: loop exit
PB: predicated region body
PF: predicated region fallthrough
CT: control target
= control target key end

     0   :  { %7 = vsyncpa [#allocation3], 0  ;;  %s186_s0 = inlined_call_operand.hbm [shape: f32[8,64], index: 0, kind: input, shape index: {}]   ;;  %s187_s1 = inlined_call_operand.hbm [shape: f32[8,64], index: 1, kind: input, shape index: {}]   ;;  %s188_s2 = inlined_call_operand.hbm [shape: f32[8,64], index: 2, kind: output, shape index: {}]  }
   0x1   :  { %8 = vsyncpa [#allocation6], 0 }
   0x2   :  { %9 = vsyncpa [#allocation4], 0  ;;  %s132_s9 = smov [#allocation2]   ;;  %s133_s11 = smov [#allocation5]  }
   0x3   :  { %s16_s10 = sshll.u32 %s132_s9, 4  ;;  %s26_s12 = sshll.u32 %s133_s11, 4  ;;  %s17_s10 = int_to_ptr.vmem [resolvable:$true] %s16_s10  ;;  %s27_s12 = int_to_ptr.vmem [resolvable:$true] %s26_s12 }
   0x4   :  { %s60_s15 = scalar_lea.hbm %s186_s0, 128 }
   0x5   :  { %p61_p0 = scmp.ne.s32.totalorder %s186_s0, %s60_s15  ;;  %p64_p1 = scmp.lt.u32.totalorder %s60_s15, %s186_s0 }
   0x7   :  { %p66_p2 = pnand %p64_p1, %p61_p0 }
   0x9   :  { %69 = shalt.err (!%p66_p2)
}
   0xa   :  { %s70_s20 = scalar_lea.vmem %s17_s10, 128  ;;  %p75_p4 = scmp.lt.s32.totalorder %s17_s10, %s17_s10 }
   0xb   :  { %p71_p3 = scmp.ne.s32.totalorder %s17_s10, %s70_s20  ;;  %p76_p5 = scmp.lt.s32.totalorder %s70_s20, %s70_s20 }
   0xd   :  { %p77_p6 = por %p76_p5, %p75_p4 }
   0xf   :  { %p78_p7 = pnand %p77_p6, %p71_p3 }
  0x11   :  { %81 = shalt.err (!%p78_p7)
}
  0x12   :  { %19 = dma.hbm_to_vmem [thread:$0]  %s186_s0, 128, %s17_s10, [#allocation3]  }
  0x13   :  { %s82_s25 = scalar_lea.hbm %s187_s1, 128 }
  0x14   :  { %p83_p8 = scmp.ne.s32.totalorder %s187_s1, %s82_s25  ;;  %p86_p9 = scmp.lt.u32.totalorder %s82_s25, %s187_s1 }
  0x16   :  { %p88_p10 = pnand %p86_p9, %p83_p8 }
  0x18   :  { %91 = shalt.err (!%p88_p10)
}
  0x19   :  { %s92_s30 = scalar_lea.vmem %s27_s12, 128  ;;  %p97_p12 = scmp.lt.s32.totalorder %s27_s12, %s27_s12 }
  0x1a   :  { %p93_p11 = scmp.ne.s32.totalorder %s27_s12, %s92_s30  ;;  %p98_p13 = scmp.lt.s32.totalorder %s92_s30, %s92_s30 }
  0x1c   :  { %p99_p0 = por %p98_p13, %p97_p12 }
  0x1e   :  { %p100_p1 = pnand %p99_p0, %p93_p11 }
  0x20   :  { %103 = shalt.err (!%p100_p1)
}
  0x21   :  { %29 = dma.hbm_to_vmem [thread:$0]  %s187_s1, 128, %s27_s12, [#allocation6]  }
  0x22   :  { %126 = dma.done.wait [#allocation3], 128  }
  0x23   :  { %127 = vsyncadd [#allocation3], 4294967168 }
  0x24   :  { %128 = dma.done.wait [#allocation6], 128  }
  0x25   :  { %129 = vsyncadd [#allocation6], 4294967168  ;;  %s134_s4 = smov [#allocation7]   ;;  %v36_v0 = vld [vmem:[#allocation5] sm:$0xff]  ;;  %v37_v1 = vld [vmem:[#allocation2] sm:$0xff]  ;;  %vm39_vm0 = vcmask 523264  }
  0x26   :  { %s47_s5 = sshll.u32 %s134_s4, 4  ;;  %v38_v2 = vadd.f32 %v37_v1, %v36_v0  ;;  %s48_s5 = int_to_ptr.vmem [resolvable:$true] %s47_s5 }
  0x27   :  { %s104_s6 = scalar_lea.vmem %s48_s5, 128  ;;  %p109_p3 = scmp.lt.s32.totalorder %s48_s5, %s48_s5 }
  0x28   :  { %40 = vst.msk [vmem:[#allocation7] sm:$0xff] %vm39_vm0, %v38_v2  ;;  %p105_p2 = scmp.ne.s32.totalorder %s48_s5, %s104_s6  ;;  %p110_p4 = scmp.lt.s32.totalorder %s104_s6, %s104_s6 }
  0x2a   :  { %p111_p5 = por %p110_p4, %p109_p3 }
  0x2c   :  { %p112_p6 = pnand %p111_p5, %p105_p2 }
  0x2e   :  { %115 = shalt.err (!%p112_p6)
}
  0x2f   :  { %s116_s8 = scalar_lea.hbm %s188_s2, 128 }
  0x30   :  { %p117_p7 = scmp.ne.s32.totalorder %s188_s2, %s116_s8  ;;  %p120_p8 = scmp.lt.u32.totalorder %s116_s8, %s188_s2 }
  0x32   :  { %p122_p9 = pnand %p120_p8, %p117_p7 }
  0x34   :  { %125 = shalt.err (!%p122_p9)
}
  0x35   :  { %50 = dma.vmem_to_hbm [thread:$0]  %s48_s5, 128, %s188_s2, [#allocation4]  }
  0x36   :  { %130 = dma.done.wait [#allocation4], 128  }
  0x37   :  { %131 = vsyncadd [#allocation4], 4294967168 }
  0x38   :  { %54 = vsyncpa [#allocation3], 1 }
  0x39   :  { %55 = vsyncpa [#allocation6], 1 }
  0x3a   :  { %56 = vsyncpa [#allocation4], 1 }

</bundles_post_ra>
